<compile_context>
chip_gen: v7x
topology: tpu7x:2x2x1
jax: 0.10.0
libtpu: 0.0.40
codegen_flags: <defaults>
</compile_context>

<pallas_src>
import functools

import jax
import jax.numpy as jnp
import numpy as np
from jax.experimental import pallas as pl
from jax.experimental.pallas import tpu as pltpu

EPS = 1e-10


def _round_up(x, m):
    return ((x + m - 1) // m) * m


def _segment_offsets(n_agents, n_heads):
    """8-aligned row offsets of the packed projection output."""
    a8 = _round_up(n_agents, 8)
    ka8 = _round_up(n_agents * n_heads, 8)
    o_b1 = a8
    o_lam = 2 * a8
    o_phi = o_lam + ka8
    o_v = o_phi + ka8
    n_out = o_v + ka8
    return o_b1, o_lam, o_phi, o_v, n_out


# ---------------------------------------------------------------------------
# Parameter packing (done ONCE per parameter update, off the per-call path)
# ---------------------------------------------------------------------------
def pack_qplex_params(params, *, n_agents, state_dim, n_heads):
    """Fuse all projection weights into one (n_out_pad, d_in) matrix (bias as
    the last input column, applied via the ones row of x^T) plus the constant
    head-reduction matrix R (A, K*A)."""
    A, S, K = n_agents, state_dim, n_heads
    AU = params["wlam_ja"].shape[0]
    KA = K * A
    o_b1, o_lam, o_phi, o_v, n_out = _segment_offsets(A, K)

    d_in = A + S + AU + 1                      # [q | s | ja | 1]
    s_cols = slice(A, A + S)
    ja_cols = slice(A + S, A + S + AU)
    b_col = d_in - 1

    W = jnp.zeros((n_out, d_in), jnp.float32)
    # w1 rows (abs branch applied in-kernel)
    W = W.at[0:A, s_cols].set(params["ww1"].T)
    W = W.at[0:A, b_col].set(params["bw1"][0])
    # b1 rows
    W = W.at[o_b1:o_b1 + A, s_cols].set(params["wb1"].T)
    W = W.at[o_b1:o_b1 + A, b_col].set(params["bb1"][0])
    # lambda rows: row (k*A + a) <- head k weights, agent-tag bias wlam_tag[k,a]
    W = W.at[o_lam:o_lam + KA, s_cols].set(jnp.repeat(params["wlam_s"].T, A, axis=0))
    W = W.at[o_lam:o_lam + KA, ja_cols].set(jnp.repeat(params["wlam_ja"].T, A, axis=0))
    W = W.at[o_lam:o_lam + KA, b_col].set(params["wlam_tag"].reshape(-1))
    # phi rows
    W = W.at[o_phi:o_phi + KA, s_cols].set(jnp.repeat(params["wphi_s"].T, A, axis=0))
    W = W.at[o_phi:o_phi + KA, b_col].set(params["wphi_tag"].reshape(-1))
    # v rows (replicated per agent)
    W = W.at[o_v:o_v + KA, s_cols].set(jnp.repeat(params["wv"].T, A, axis=0))
    W = W.at[o_v:o_v + KA, b_col].set(jnp.repeat(params["bv"][0], A))

    # head-reduction matrix: (A, K*A) with R[a, k*A + a] = 1
    R = jnp.tile(jnp.eye(A, dtype=jnp.float32), (1, K))
    return W, R


# ---------------------------------------------------------------------------
# Kernel (rows live in the lane dimension)
# ---------------------------------------------------------------------------
def qplex_kernel(x_ref, w_ref, r_ref, out_ref, *, n_agents, n_heads):
    A, K = n_agents, n_heads
    KA = K * A
    o_b1, o_lam, o_phi, o_v, _ = _segment_offsets(A, K)

    # One fused projection for all hyper-nets / heads / agents + biases:
    # (n_out, TM) = W (n_out, d_in) @ [q | s | ja | 1]^T (d_in, TM)
    proj = jnp.dot(w_ref[...], x_ref[...], preferred_element_type=jnp.float32)

    q = x_ref[0:A, :]                                     # (A, TM)
    w1 = jnp.abs(proj[0:A, :]) + EPS                      # abs_tag branch
    b1 = proj[o_b1:o_b1 + A, :]
    lam = jax.nn.sigmoid(proj[o_lam:o_lam + KA, :])       # (K*A, TM)
    phi = jax.nn.sigmoid(proj[o_phi:o_phi + KA, :])       # (K*A, TM)
    v = proj[o_v:o_v + KA, :] + EPS                       # (K*A, TM)

    tq = q * w1 + b1                                      # (A, TM)
    adv = tq - jnp.max(tq, axis=0, keepdims=True)         # 4-sublane reduce

    # final_lambda[a, n] = sum_k (lam*phi*v)[k*A + a, n]  via tiny MXU matmul
    final_lambda = jnp.dot(r_ref[...], lam * phi * v,
                           preferred_element_type=jnp.float32)     # (A, TM)

    contrib = tq + adv * (final_lambda - 1.0)             # (A, TM)
    # agent sum -> lane-dense (1, TM) output row
    out_ref[...] = jnp.sum(contrib, axis=0, keepdims=True)


# ---------------------------------------------------------------------------
# Wrapper (jitted; takes pre-packed W/R)
# ---------------------------------------------------------------------------
@functools.partial(jax.jit, static_argnames=("n_agents", "n_heads", "tile_m"))
def qplex_forward(q_values, states, joint_action, w_packed, r_mat, *,
                  n_agents, n_heads, tile_m=2048):
    ep = q_values.shape[0]
    A = n_agents
    S = states.shape[-1]

    q = q_values.reshape(-1, A).astype(jnp.float32)
    n_rows = q.shape[0]
    s = states.reshape(n_rows, S).astype(jnp.float32)
    ja = joint_action.reshape(n_rows, -1).astype(jnp.float32)

    # rows-in-lanes input: x^T = [q | s | ja | 1]^T of shape (d_in, N)
    x = jnp.concatenate(
        [q.T, s.T, ja.T, jnp.ones((1, n_rows), jnp.float32)], axis=0)
    d_in = x.shape[0]
    assert w_packed.shape[1] == d_in

    # Tile selection: big lane tiles amortize per-grid-step overhead; keep
    # num_tiles >= 2 whenever possible so v7x can shard the parallel axis
    # across both TensorCores.
    tile_m = _round_up(max(tile_m, 128), 128)
    cap = _round_up(n_rows, 128)
    if cap >= 256:
        cap = _round_up(-(-n_rows // 2), 128)   # ceil(n/2) -> >= 2 tiles
    tile_m = min(tile_m, cap)

    n_pad = _round_up(n_rows, tile_m)
    if n_pad != n_rows:
        x = jnp.pad(x, ((0, 0), (0, n_pad - n_rows)))
    num_tiles = n_pad // tile_m

    out = pl.pallas_call(
        functools.partial(qplex_kernel, n_agents=A, n_heads=n_heads),
        out_shape=jax.ShapeDtypeStruct((1, n_pad), jnp.float32),
        grid=(num_tiles,),
        in_specs=[
            pl.BlockSpec((d_in, tile_m), lambda i: (0, i)),        # x^T rows
            pl.BlockSpec(w_packed.shape, lambda i: (0, 0)),        # fused weights
            pl.BlockSpec(r_mat.shape, lambda i: (0, 0)),           # head-reduce
        ],
        out_specs=pl.BlockSpec((1, tile_m), lambda i: (0, i)),     # lane-dense row
        compiler_params=pltpu.CompilerParams(
            dimension_semantics=("parallel",)),
    )(x, w_packed, r_mat)

    q_total = out.reshape(-1)[:n_rows]                             # drop padding
    return q_total.reshape(ep, -1, 1)


# ---------------------------------------------------------------------------
# Pure-JAX reference (mirrors the PyTorch concat/stack/permute version)
# ---------------------------------------------------------------------------
def reference_forward(q_values, states, joint_action, params, n_agents, n_heads):
    ep = q_values.shape[0]
    q = q_values.reshape(-1, n_agents).astype(jnp.float32)
    s = states.reshape(-1, states.shape[-1]).astype(jnp.float32)
    ja = joint_action.reshape(q.shape[0], -1).astype(jnp.float32)
    n_rows = s.shape[0]

    w1 = jnp.abs(s @ params["ww1"] + params["bw1"]) + EPS
    b1 = s @ params["wb1"] + params["bb1"]
    tq = q * w1 + b1
    adv = tq - jnp.max(tq, axis=-1, keepdims=True)

    s_rep = jnp.repeat(s[:, None, :], n_agents, axis=1)
    tag = jnp.broadcast_to(jnp.eye(n_agents, dtype=s.dtype), (n_rows, n_agents, n_agents))
    ja_rep = jnp.repeat(ja[:, None, :], n_agents, axis=1)
    sa = jnp.concatenate([s_rep, ja_rep, tag], axis=-1).reshape(n_rows * n_agents, -1)
    sf = jnp.concatenate([s_rep, tag], axis=-1).reshape(n_rows * n_agents, -1)

    lam_list, phi_list, v_list = [], [], []
    for k in range(n_heads):
        lam_list.append(jax.nn.sigmoid(sa @ params["wlam_full"][k][:, None]))
        phi_list.append(jax.nn.sigmoid(sf @ params["wphi_full"][k][:, None]))
        v_list.append(s @ params["wv"][:, k:k + 1] + params["bv"][:, k:k + 1] + EPS)

    lam_all = jnp.stack(lam_list, 0).transpose(1, 2, 0).reshape(n_rows, n_agents, n_heads)
    phi_all = jnp.stack(phi_list, 0).transpose(1, 2, 0).reshape(n_rows, n_agents, n_heads)
    v_all = jnp.tile(jnp.stack(v_list, 0).transpose(1, 2, 0), (1, n_agents, 1))
    final_lambda = (lam_all * phi_all * v_all).sum(-1)

    q_total = (tq + adv * (final_lambda - 1.0)).sum(-1)
    return q_total.reshape(ep, -1, 1)


def init_params(key, state_dim, n_agents, n_actions, n_heads):
    lambda_dim = state_dim + n_agents * n_actions + n_agents
    phi_dim = state_dim + n_agents
    ks = jax.random.split(key, 8)

    def unif(k, shape, fan_in):
        bound = 1.0 / np.sqrt(fan_in)
        return jax.random.uniform(k, shape, jnp.float32, -bound, bound)

    wlam_full = unif(ks[4], (n_heads, lambda_dim), lambda_dim)
    wphi_full = unif(ks[5], (n_heads, phi_dim), phi_dim)
    au = n_agents * n_actions
    params = {
        "ww1": unif(ks[0], (state_dim, n_agents), state_dim),
        "bw1": unif(ks[1], (1, n_agents), state_dim),
        "wb1": unif(ks[2], (state_dim, n_agents), state_dim),
        "bb1": unif(ks[3], (1, n_agents), state_dim),
        # split per-head lambda/phi weights into state / joint-action / agent-tag parts
        "wlam_s": wlam_full[:, :state_dim].T,                 # (S, K)
        "wlam_ja": wlam_full[:, state_dim:state_dim + au].T,  # (A*U, K)
        "wlam_tag": wlam_full[:, state_dim + au:],            # (K, A)
        "wphi_s": wphi_full[:, :state_dim].T,                 # (S, K)
        "wphi_tag": wphi_full[:, state_dim:],                 # (K, A)
        "wv": unif(ks[6], (state_dim, n_heads), state_dim),   # (S, K)
        "bv": unif(ks[7], (1, n_heads), state_dim),           # (1, K)
        # full per-head weights kept only for the pure-JAX reference
        "wlam_full": wlam_full,
        "wphi_full": wphi_full,
    }
    return params


if __name__ == "__main__":
    episode_num, T = 2, 8
    n_agents, n_actions = 4, 6
    state_dim, n_heads = 32, 4

    key = jax.random.PRNGKey(0)
    k_q, k_s, k_a, k_p = jax.random.split(key, 4)

    q_values = jax.random.normal(k_q, (episode_num, T, n_agents), jnp.float32)
    states = jax.random.normal(k_s, (episode_num, T, state_dim), jnp.float32)
    actions = jax.random.randint(k_a, (episode_num, T, n_agents), 0, n_actions)
    joint_action = jax.nn.one_hot(actions, n_actions, dtype=jnp.float32)  # (ep, T, A, U)

    params = init_params(k_p, state_dim, n_agents, n_actions, n_heads)

    # Pack once per parameter update (hoisted off the per-call path).
    W, R = pack_qplex_params(params, n_agents=n_agents,
                             state_dim=state_dim, n_heads=n_heads)
    W, R = jax.block_until_ready((W, R))

    out = qplex_forward(q_values, states, joint_action, W, R,
                        n_agents=n_agents, n_heads=n_heads)
    out = jax.block_until_ready(out)

    ref = reference_forward(q_values, states, joint_action, params, n_agents, n_heads)
    assert out.shape == (episode_num, T, 1)
    np.testing.assert_allclose(np.asarray(out), np.asarray(ref), rtol=1e-4, atol=1e-4)

    print("KERNEL_OK")
</pallas_src>

<mosaic_0001>
module attributes {stable_mosaic.version = 11 : i64} {
  func.func @qplex_kernel(%arg0: i32, %arg1: memref<61x128xf32, #tpu.memory_space<vmem>>, %arg2: memref<64x61xf32, #tpu.memory_space<vmem>>, %arg3: memref<4x16xf32, #tpu.memory_space<vmem>>, %arg4: memref<1x128xf32, #tpu.memory_space<vmem>>) attributes {dimension_semantics = [#tpu.dimension_semantics<parallel>], iteration_bounds = array<i64: 1>, scalar_prefetch = 0 : i64, scratch_operands = 0 : i64, tpu.core_type = #tpu.core_type<tc>, window_params = [{transform_indices = @transform_0, window_bounds = array<i64: 61, 128>}, {pipeline_mode = #tpu.pipeline_mode<synchronous>, transform_indices = @transform_1, window_bounds = array<i64: 64, 61>}, {pipeline_mode = #tpu.pipeline_mode<synchronous>, transform_indices = @transform_2, window_bounds = array<i64: 4, 16>}, {transform_indices = @transform_3, window_bounds = array<i64: 1, 128>}]} {
    %c0 = arith.constant 0 : index
    %c0_0 = arith.constant 0 : index
    %0 = vector.load %arg2[%c0, %c0_0] : memref<64x61xf32, #tpu.memory_space<vmem>>, vector<64x61xf32>
    %c0_1 = arith.constant 0 : index
    %c0_2 = arith.constant 0 : index
    %1 = vector.load %arg1[%c0_1, %c0_2] : memref<61x128xf32, #tpu.memory_space<vmem>>, vector<61x128xf32>
    %cst = arith.constant dense<0.000000e+00> : vector<64x128xf32>
    %2 = tpu.matmul %0, %1, %cst {dimension_numbers = #tpu.dot_dimension_numbers<[1], [0], [0], [1], [0, 0, 1, 1], [], []>} : vector<64x61xf32>, vector<61x128xf32>, vector<64x128xf32> -> vector<64x128xf32>
    %c0_3 = arith.constant 0 : index
    %c0_4 = arith.constant 0 : index
    %3 = vector.load %arg1[%c0_3, %c0_4] : memref<61x128xf32, #tpu.memory_space<vmem>>, vector<4x128xf32>
    %4 = vector.extract_strided_slice %2 {offsets = [0, 0], sizes = [4, 128], strides = [1, 1]} : vector<64x128xf32> to vector<4x128xf32>
    %5 = math.absf %4 : vector<4x128xf32>
    %cst_5 = arith.constant 1.000000e-10 : f32
    %6 = vector.broadcast %cst_5 : f32 to vector<4x128xf32>
    %7 = arith.addf %5, %6 : vector<4x128xf32>
    %8 = vector.extract_strided_slice %2 {offsets = [8, 0], sizes = [4, 128], strides = [1, 1]} : vector<64x128xf32> to vector<4x128xf32>
    %9 = vector.extract_strided_slice %2 {offsets = [16, 0], sizes = [16, 128], strides = [1, 1]} : vector<64x128xf32> to vector<16x128xf32>
    %10 = arith.negf %9 : vector<16x128xf32>
    %11 = math.exp %10 : vector<16x128xf32>
    %cst_6 = arith.constant 1.000000e+00 : f32
    %12 = vector.broadcast %cst_6 : f32 to vector<16x128xf32>
    %13 = arith.addf %12, %11 : vector<16x128xf32>
    %14 = arith.divf %12, %13 : vector<16x128xf32>
    %15 = vector.extract_strided_slice %2 {offsets = [32, 0], sizes = [16, 128], strides = [1, 1]} : vector<64x128xf32> to vector<16x128xf32>
    %16 = arith.negf %15 : vector<16x128xf32>
    %17 = math.exp %16 : vector<16x128xf32>
    %cst_7 = arith.constant 1.000000e+00 : f32
    %18 = vector.broadcast %cst_7 : f32 to vector<16x128xf32>
    %19 = arith.addf %18, %17 : vector<16x128xf32>
    %20 = arith.divf %18, %19 : vector<16x128xf32>
    %21 = vector.extract_strided_slice %2 {offsets = [48, 0], sizes = [16, 128], strides = [1, 1]} : vector<64x128xf32> to vector<16x128xf32>
    %cst_8 = arith.constant 1.000000e-10 : f32
    %22 = vector.broadcast %cst_8 : f32 to vector<16x128xf32>
    %23 = arith.addf %21, %22 : vector<16x128xf32>
    %24 = arith.mulf %3, %7 : vector<4x128xf32>
    %25 = arith.addf %24, %8 : vector<4x128xf32>
    %cst_9 = arith.constant dense<0xFF800000> : vector<128xf32>
    %26 = vector.multi_reduction <maximumf>, %25, %cst_9 [0] : vector<4x128xf32> to vector<128xf32>
    %27 = vector.shape_cast %26 : vector<128xf32> to vector<1x128xf32>
    %28 = vector.broadcast %27 : vector<1x128xf32> to vector<4x128xf32>
    %29 = arith.subf %25, %28 : vector<4x128xf32>
    %c0_10 = arith.constant 0 : index
    %c0_11 = arith.constant 0 : index
    %30 = vector.load %arg3[%c0_10, %c0_11] : memref<4x16xf32, #tpu.memory_space<vmem>>, vector<4x16xf32>
    %31 = arith.mulf %14, %20 : vector<16x128xf32>
    %32 = arith.mulf %31, %23 : vector<16x128xf32>
    %cst_12 = arith.constant dense<0.000000e+00> : vector<4x128xf32>
    %33 = tpu.matmul %30, %32, %cst_12 {dimension_numbers = #tpu.dot_dimension_numbers<[1], [0], [0], [1], [0, 0, 1, 1], [], []>} : vector<4x16xf32>, vector<16x128xf32>, vector<4x128xf32> -> vector<4x128xf32>
    %cst_13 = arith.constant 1.000000e+00 : f32
    %34 = vector.broadcast %cst_13 : f32 to vector<4x128xf32>
    %35 = arith.subf %33, %34 : vector<4x128xf32>
    %36 = arith.mulf %29, %35 : vector<4x128xf32>
    %37 = arith.addf %25, %36 : vector<4x128xf32>
    %cst_14 = arith.constant dense<0.000000e+00> : vector<128xf32>
    %38 = vector.multi_reduction <add>, %37, %cst_14 [0] : vector<4x128xf32> to vector<128xf32>
    %39 = vector.shape_cast %38 : vector<128xf32> to vector<1x128xf32>
    %c0_15 = arith.constant 0 : index
    %c0_16 = arith.constant 0 : index
    %40 = vector.load %arg4[%c0_15, %c0_16] : memref<1x128xf32, #tpu.memory_space<vmem>>, vector<1x128xf32>
    tpu.vector_store %arg4[%c0_15, %c0_16], %39 {strides = array<i32>} : memref<1x128xf32, #tpu.memory_space<vmem>>, vector<1x128xf32>,
    return
  }
  func.func @transform_0(%arg0: i32) -> (i32, i32) {
    %c0_i32 = arith.constant 0 : i32
    %c0_i32_0 = arith.constant 0 : i32
    return %c0_i32, %arg0 : i32, i32
  }
  func.func @transform_1(%arg0: i32) -> (i32, i32) {
    %c0_i32 = arith.constant 0 : i32
    %c0_i32_0 = arith.constant 0 : i32
    %c0_i32_1 = arith.constant 0 : i32
    return %c0_i32, %c0_i32_0 : i32, i32
  }
  func.func @transform_2(%arg0: i32) -> (i32, i32) {
    %c0_i32 = arith.constant 0 : i32
    %c0_i32_0 = arith.constant 0 : i32
    %c0_i32_1 = arith.constant 0 : i32
    return %c0_i32, %c0_i32_0 : i32, i32
  }
  func.func @transform_3(%arg0: i32) -> (i32, i32) {
    %c0_i32 = arith.constant 0 : i32
    %c0_i32_0 = arith.constant 0 : i32
    return %c0_i32, %arg0 : i32, i32
  }
}

</mosaic_0001>

<bundles_post_ra>
// kernel: qplex_forward.1
= control target key start
LH: loop header
LB: loop body
LE: loop exit
PB: predicated region body
PF: predicated region fallthrough
CT: control target
= control target key end

     0   :  { %vm30_vm0 = vcmask 498688   ;;  %vm55_vm1 = vcmask 1044480   ;;  %vm416_vm2 = vmmov 1   ;;  %v417_v20 = vmov 0.0|0.0   ;;  %s505_s0 = inlined_call_operand.vmem [shape: f32[61,128], index: 0, kind: input, shape index: {}]   ;;  %s506_s1 = inlined_call_operand.vmem [shape: f32[64,61], index: 1, kind: input, shape index: {}]   ;;  %s507_s2 = inlined_call_operand.vmem [shape: f32[4,16], index: 2, kind: input, shape index: {}]   ;;  %s508_s3 = inlined_call_operand.vmem [shape: f32[1,128], index: 3, kind: output, shape index: {}]  }
   0x1   :  { %v22_v0 = vld [vmem:[%s505_s0] sm:$0xff]  ;;  %v23_v1 = vld [vmem:[%s505_s0 + $0x8] sm:$0xff]  ;;  %v24_v2 = vld [vmem:[%s505_s0 + $0x10] sm:$0xff]  ;;  %vm418_vm4 = vmmov 0   ;;  %v419_v21 = vmov 0.0   ;;  %vm209_vm5 = vcmask 130048  }
   0x2   :  { %v367_v3 = vpack.c.bf16 %v23_v1, %v22_v0  ;;  %v25_v4 = vld [vmem:[%s505_s0 + $0x18] sm:$0xff]  ;;  %v26_v6 = vld [vmem:[%s505_s0 + $0x20] sm:$0xff]  ;;  %v27_v7 = vld [vmem:[%s505_s0 + $0x28] sm:$0xff]  ;;  %vm195_vm6 = vcmask 1043456  }
   0x3   :  { %v371_v5 = vpack.c.bf16 %v25_v4, %v24_v2  ;;  %v14_v8 = vld [vmem:[%s506_s1] sm:$0xff]  ;;  %v375_v9 = vpack.c.bf16 %v27_v7, %v26_v6  ;;  %v20_v10 = vld [vmem:[%s506_s1 + $0x30] sm:$0xff]  ;;  %v29_v12 = vld [vmem:[%s505_s0 + $0x38] sm:$0x1f] }
   0x4   :  { %368 = vmatprep.subr.bf16.mxu0 %v367_v3  ;;  %388 = vmatprep.subr.bf16.mxu1 %v367_v3  ;;  %v28_v11 = vld [vmem:[%s505_s0 + $0x30] sm:$0xff]  ;;  %vm380_vm3 = vmpackc.low %vm55_vm1, %vm416_vm2  ;;  %v15_v14 = vld [vmem:[%s506_s1 + $0x8] sm:$0xff] }
   0x5   :  { %370 = vmatpush3.bf16.msra.mxu0 %v367_v3  ;;  %348 = vmatprep.mubr.msk.f32.mxu0 %vm30_vm0, %v14_v8  ;;  %v379_v13 = vpack.c.bf16 %v29_v12, %v28_v11  ;;  %v16_v15 = vld [vmem:[%s506_s1 + $0x10] sm:$0xff]  ;;  %v21_v16 = vld [vmem:[%s506_s1 + $0x38] sm:$0xff]  ;;  %v18_v18 = vld [vmem:[%s506_s1 + $0x20] sm:$0xff] }
   0x6   :  { %372 = vmatprep.subr.bf16.mxu0 %v371_v5  ;;  %392 = vmatpush3.bf16.msra.mxu1 %v367_v3  ;;  %v17_v17 = vld [vmem:[%s506_s1 + $0x18] sm:$0xff]  ;;  %v19_v19 = vld [vmem:[%s506_s1 + $0x28] sm:$0xff]  ;;  %v164_v27 = vld [vmem:[%s505_s0] sm:$0xf] }
   0x7   :  { %389 = vmatprep.subr.bf16.mxu1 %v371_v5  ;;  %357 = vmatprep.mubr.msk.f32.mxu1 %vm30_vm0, %v20_v10  ;;  %v204_v58 = vld [vmem:[%s507_s2] sm:$0xf] }
   0x9   :  { %374 = vmatpush3.bf16.msra.mxu0 %v371_v5 }
   0xa   :  { %376 = vmatprep.subr.bf16.mxu0 %v375_v9  ;;  %393 = vmatpush3.bf16.msra.mxu1 %v371_v5 }
   0xb   :  { %390 = vmatprep.subr.bf16.mxu1 %v375_v9 }
   0xd   :  { %378 = vmatpush3.bf16.msra.mxu0 %v375_v9 }
   0xe   :  { %381 = vmatprep.subr.msk.bf16.mxu0 %vm380_vm3, %v379_v13  ;;  %394 = vmatpush3.bf16.msra.mxu1 %v375_v9 }
   0xf   :  { %391 = vmatprep.subr.msk.bf16.mxu1 %vm380_vm3, %v379_v13 }
  0x11   :  { %384 = vmatpush3.bf16.msk.msra.mxu0 %vm380_vm3, %v379_v13 }
  0x12   :  { %395 = vmatpush3.bf16.msk.msra.mxu1 %vm380_vm3, %v379_v13 }
  0x13   :  { %385 = vmatprep.subr.bf16.mxu1 %v417_v20 }
  0x14   :  { %349 = vmatmul.mubr.msk.f32.vlgmr.msra.gmra.mrb[0].mxu0 %vm30_vm0, %v15_v14 }
  0x15   :  { %351 = vmatprep.mubr.msk.f32.mxu0 %vm30_vm0, %v16_v15  ;;  %358 = vmatmul.mubr.msk.f32.vlgmr.msra.gmra.mrb[0].mxu1 %vm30_vm0, %v21_v16 }
  0x16   :  { %364 = vmatprep.mubr.msk.f32.mxu1 %vm418_vm4, %v419_v21 }
  0x18   :  { %352 = vmatmul.mubr.msk.f32.gmra.mrb[2].mxu0 %vm30_vm0, %v17_v17 }
  0x19   :  { %354 = vmatprep.mubr.msk.f32.mxu0 %vm30_vm0, %v18_v18 }
  0x1c   :  { %355 = vmatmul.mubr.msk.f32.gmra.mrb[4].mxu0 %vm30_vm0, %v19_v19 }
  0xe7   :  { %v350_v22 = vpop.f32.mrb[0].mxu0 }
  0xe8   :  { %v125_v23 = vpop.f32.mrb[1].mxu0  ;;  %v359_v24 = vpop.f32.mrb[0].mxu1 }
  0xe9   :  { %v165_v25 = vand.u32 2147483647, %v125_v23  ;;  %v155_v26 = vpop.f32.mrb[1].mxu1  ;;  %v192_v49 = vadd.f32 1e-10, %v359_v24 }
  0xea   :  { %v191_v51 = vadd.f32 1e-10, %v155_v26 }
  0xeb   :  { %v166_v28 = vadd.f32 1e-10, %v165_v25  ;;  %v353_v29 = vpop.f32.mrb[2].mxu0 }
  0xec   :  { %v308_v30 = vmul.f32 -1.442695, %v353_v29  ;;  %v135_v31 = vpop.f32.mrb[3].mxu0 }
  0xed   :  { %v193_v32 = vmul.f32 %v166_v28, %v164_v27  ;;  %v307_v33 = vmul.f32 -1.442695, %v135_v31 }
  0xee   :  { %400 = vpow2.f32 %v308_v30 }
  0xef   :  { %v194_v34 = vadd.f32 %v350_v22, %v193_v32  ;;  %402 = vpow2.f32 %v307_v33  ;;  %v356_v35 = vpop.f32.mrb[4].mxu0 }
  0xf0   :  { %v310_v36 = vmul.f32 -1.442695, %v356_v35  ;;  %v145_v37 = vpop.f32.mrb[5].mxu0 }
  0xf1   :  { %v309_v38 = vmul.f32 -1.442695, %v145_v37  ;;  %v196_v59 = vsel %vm195_vm6, %v194_v34, -inf }
  0xf2   :  { %404 = vpow2.f32 %v310_v36  ;;  %v197_v60 = vrot.slane %v196_v59, 4 }
  0xf3   :  { %406 = vpow2.f32 %v309_v38 }
  0xf4   :  { %v198_v61 = vmax.f32 %v196_v59, %v197_v60 }
  0xf6   :  { %v199_v62 = vrot.slane %v198_v61, 2 }
  0xf8   :  { %v401_v39 = vpop.eup %400  ;;  %v200_v63 = vmax.f32 %v198_v61, %v199_v62 }
  0xf9   :  { %v403_v40 = vpop.eup %402  ;;  %v174_v41 = vadd.f32 1.0, %v401_v39 }
  0xfa   :  { %v173_v42 = vadd.f32 1.0, %v403_v40  ;;  %v201_v0 = vrot.slane %v200_v63, 1 }
  0xfb   :  { %408 = vrcp.f32 %v174_v41 }
  0xfc   :  { %v405_v43 = vpop.eup %404  ;;  %410 = vrcp.f32 %v173_v42  ;;  %v202_v1 = vmax.f32 %v200_v63, %v201_v0 }
  0xfd   :  { %v407_v44 = vpop.eup %406  ;;  %v186_v45 = vadd.f32 1.0, %v405_v43 }
  0xfe   :  { %v185_v46 = vadd.f32 1.0, %v407_v44  ;;  %v203_v3 = vsub.f32 %v194_v34, %v202_v1 }
  0xff   :  { %412 = vrcp.f32 %v186_v45 }
 0x100   :  { %414 = vrcp.f32 %v185_v46 }
 0x105   :  { %v409_v47 = vpop.eup %408 }
 0x106   :  { %v411_v48 = vpop.eup %410 }
 0x109   :  { %v413_v50 = vpop.eup %412 }
 0x10a   :  { %v415_v52 = vpop.eup %414  ;;  %v206_v53 = vmul.f32 %v413_v50, %v409_v47 }
 0x10b   :  { %v205_v54 = vmul.f32 %v415_v52, %v411_v48 }
 0x10c   :  { %v208_v55 = vmul.f32 %v206_v53, %v192_v49 }
 0x10d   :  { %v207_v56 = vmul.f32 %v205_v54, %v191_v51 }
 0x10f   :  { %v386_v57 = vpack.c.bf16 %v208_v55, %v207_v56 }
 0x111   :  { %387 = vmatpush3.bf16.msra.mxu1 %v386_v57 }
 0x114   :  { %365 = vmatmul.mubr.msk.f32.vlgmr.msra.gmra.mrb[2].mxu1 %vm209_vm5, %v204_v58 }
 0x1e7   :  { %v279_v2 = vpop.f32.mrb[2].mxu1 }
 0x1e8   :  { %v312_v4 = vadd.f32 -1.0, %v279_v2  ;;  %v366_v5 = vpop.f32.mrb[3].mxu1 }
 0x1ea   :  { %v284_v6 = vmul.f32 %v312_v4, %v203_v3 }
 0x1ec   :  { %v285_v7 = vadd.f32 %v284_v6, %v194_v34 }
 0x1ee   :  { %v286_v8 = vsel %vm195_vm6, %v285_v7, 0.0 }
 0x1ef   :  { %v287_v9 = vrot.slane %v286_v8, 4 }
 0x1f1   :  { %v288_v10 = vadd.f32 %v287_v9, %v286_v8 }
 0x1f3   :  { %v289_v11 = vrot.slane %v288_v10, 2 }
 0x1f5   :  { %v290_v12 = vadd.f32 %v289_v11, %v288_v10 }
 0x1f7   :  { %v291_v13 = vrot.slane %v290_v12, 1 }
 0x1f9   :  { %v292_v14 = vadd.f32 %v291_v13, %v290_v12 }
 0x1fb   :  { %293 = vst [vmem:[%s508_s3] sm:$0x1] %v292_v14 }

</bundles_post_ra>
